<compile_context>
chip_gen: v7x
topology: tpu7x:2x2x1
jax: 0.10.0
libtpu: 0.0.40
codegen_flags: <defaults>
</compile_context>

<pallas_src>
import functools
import math

import jax
import jax.numpy as jnp
from jax.experimental import pallas as pl
from jax.experimental.pallas import tpu as pltpu

_CHUNK_ROWS = 8           # rows per in-kernel chunk (one sublane group of the result)
_MAX_CHUNKS_PER_STEP = 4  # up to 32 rows (~0.5 MiB logical, ~1 MiB padded VMEM) per grid step


def _frat_kernel(te_ref, out_ref, *, scale, chunk):
    """te_ref block: (T, s^2, ssum^2) f32; out_ref block: (1, 1, T) f32."""
    n_chunks = te_ref.shape[0] // chunk
    rows = []
    for c in range(n_chunks):
        # Static slice of `chunk` rows: ~32 vregs live, reduced immediately.
        te = te_ref[pl.ds(c * chunk, chunk), :, :]            # (chunk, s^2, ssum^2)
        rng = jnp.max(te, axis=1) - jnp.min(te, axis=1)        # sublane reduce -> (chunk, ssum^2)
        tp = rng * scale + 1.0                                 # == rng / (s/kernel) + 1
        rows.append(jnp.log(jnp.sum(tp, axis=-1)))             # lane reduce + EUP log -> (chunk,)
    res = rows[0] if n_chunks == 1 else jnp.concatenate(rows, axis=0)   # (T,)
    out_ref[...] = res[None, None, :].astype(out_ref.dtype)             # single lane-dense store


def _unfold(x, s):
    """nn.Unfold(kernel_size=s) on NCHW input -> (B, C*s*s, (H-s+1)*(W-s+1))."""
    B, C, H, W = x.shape
    oh, ow = H - s + 1, W - s + 1
    # patches[b, c, ki, kj, pi, pj] = x[b, c, pi+ki, pj+kj]
    patches = jnp.stack(
        [jnp.stack([x[:, :, ki:ki + oh, kj:kj + ow] for kj in range(s)], axis=2)
         for ki in range(s)],
        axis=2,
    )  # (B, C, s, s, oh, ow)
    return patches.reshape(B, C * s * s, oh * ow)


@functools.partial(jax.jit, static_argnums=(1, 2))
def _frat_forward(x, kernel_size, s_size):
    B, C, H, W = x.shape
    s = s_size
    ssum = kernel_size - s_size + 1
    s2 = s * s
    g2 = ssum * ssum                              # number of "groups" in the torch view

    te = _unfold(x, s)                            # (B, C*s^2, L) -- fuses into one XLA producer
    L = te.shape[2]
    # torch .view(B, C, sum^2, s^2) only works when L == sum^2 (i.e. H == W == kernel_size)
    assert L == g2, "FratPirorBlock requires H == W == kernel_size"
    te = te.reshape(B, C, g2, s2)                 # raw row-major regrouping == torch .view
    te = jnp.swapaxes(te, 2, 3)                   # lane-dense: (B, C, s^2, ssum^2)
    te = te.reshape(B * C, s2, g2)                # merge batch & channel into rows

    # --- tiling ---------------------------------------------------------------
    N = B * C
    n_chunks_total = (N + _CHUNK_ROWS - 1) // _CHUNK_ROWS
    chunks_per_step = min(n_chunks_total, _MAX_CHUNKS_PER_STEP)
    T = chunks_per_step * _CHUNK_ROWS             # rows per grid step
    num_steps = (N + T - 1) // T
    Np = num_steps * T
    if Np != N:
        # Zero padding is harmless: rng=0 -> tp=1 -> log(ssum^2); padded rows are sliced off.
        te = jnp.pad(te, ((0, Np - N), (0, 0), (0, 0)))

    scale = float(kernel_size) / float(s_size)    # == 1 / (s_size / kernel_size)

    cost = pl.CostEstimate(
        flops=2 * Np * s2 * g2 + 4 * Np * g2,     # max/min compares + scale/add/sum
        transcendentals=Np,                       # one log per (b, c)
        bytes_accessed=Np * s2 * g2 * 4 + Np * 4,
    )

    out3d = pl.pallas_call(
        functools.partial(_frat_kernel, scale=scale, chunk=_CHUNK_ROWS),
        out_shape=jax.ShapeDtypeStruct((num_steps, 1, T), te.dtype),
        grid=(num_steps,),
        in_specs=[pl.BlockSpec((T, s2, g2), lambda i: (i, 0, 0))],
        out_specs=pl.BlockSpec((1, 1, T), lambda i: (i, 0, 0)),
        compiler_params=pltpu.CompilerParams(dimension_semantics=("parallel",)),
        cost_estimate=cost,
    )(te)

    return out3d.reshape(Np)[:N].reshape(B, C)


def frat_piror_block(x, kernel_size, s_size, image_size):
    """Returns (log(tp_max), log(kernel_size / s_size)) — same as the PyTorch module."""
    del image_size  # only used by the module constructor, not by forward math
    out = _frat_forward(x, kernel_size, s_size)
    return out, math.log(kernel_size / s_size)


def _reference(x, kernel_size, s_size):
    """Pure-JAX reference mirroring the PyTorch forward, for validation."""
    B, C, H, W = x.shape
    ssum = kernel_size - s_size + 1
    te = _unfold(x, s_size)
    te = te.reshape(B, C, ssum * ssum, s_size * s_size)
    tp = (jnp.max(te, axis=3) - jnp.min(te, axis=3)) / (s_size / kernel_size) + 1.0
    tp = jnp.sum(tp, axis=2)
    return jnp.log(tp)


if __name__ == "__main__":
    kernel_size = 16
    s_size = 4
    image_size = 16          # forward requires spatial size == kernel_size
    B, C = 2, 4

    key = jax.random.PRNGKey(0)
    x = jax.random.normal(key, (B, C, image_size, image_size), dtype=jnp.float32)

    out, const_log = frat_piror_block(x, kernel_size, s_size, image_size)
    out = jax.block_until_ready(out)

    ref = _reference(x, kernel_size, s_size)
    assert out.shape == (B, C)
    assert jnp.allclose(out, ref, rtol=1e-5, atol=1e-5), "Pallas output mismatch vs reference"
    assert abs(const_log - math.log(kernel_size / s_size)) < 1e-12

    print("KERNEL_OK")
</pallas_src>

<mosaic_0001>
module attributes {stable_mosaic.version = 11 : i64} {
  func.func @_frat_kernel(%arg0: i32, %arg1: memref<8x16x169xf32, #tpu.memory_space<vmem>>, %arg2: memref<1x1x8xf32, #tpu.memory_space<vmem>>) attributes {dimension_semantics = [#tpu.dimension_semantics<parallel>], iteration_bounds = array<i64: 1>, scalar_prefetch = 0 : i64, scratch_operands = 0 : i64, tpu.core_type = #tpu.core_type<tc>, window_params = [{transform_indices = @transform_0, window_bounds = array<i64: 8, 16, 169>}, {transform_indices = @transform_1, window_bounds = array<i64: 1, 1, 8>}]} {
    %c0 = arith.constant 0 : index
    %c0_0 = arith.constant 0 : index
    %c0_1 = arith.constant 0 : index
    %0 = vector.load %arg1[%c0, %c0_0, %c0_1] : memref<8x16x169xf32, #tpu.memory_space<vmem>>, vector<8x16x169xf32>
    %cst = arith.constant dense<0xFF800000> : vector<8x169xf32>
    %1 = vector.multi_reduction <maximumf>, %0, %cst [1] : vector<8x16x169xf32> to vector<8x169xf32>
    %cst_2 = arith.constant dense<0x7F800000> : vector<8x169xf32>
    %2 = vector.multi_reduction <minimumf>, %0, %cst_2 [1] : vector<8x16x169xf32> to vector<8x169xf32>
    %3 = arith.subf %1, %2 : vector<8x169xf32>
    %cst_3 = arith.constant 4.000000e+00 : f32
    %4 = vector.broadcast %cst_3 : f32 to vector<8x169xf32>
    %5 = arith.mulf %3, %4 : vector<8x169xf32>
    %cst_4 = arith.constant 1.000000e+00 : f32
    %6 = vector.broadcast %cst_4 : f32 to vector<8x169xf32>
    %7 = arith.addf %5, %6 : vector<8x169xf32>
    %cst_5 = arith.constant dense<0.000000e+00> : vector<8xf32>
    %8 = vector.multi_reduction <add>, %7, %cst_5 [1] : vector<8x169xf32> to vector<8xf32>
    %9 = math.log %8 : vector<8xf32>
    %10 = vector.shape_cast %9 : vector<8xf32> to vector<1x1x8xf32>
    %c0_6 = arith.constant 0 : index
    %c0_7 = arith.constant 0 : index
    %c0_8 = arith.constant 0 : index
    %11 = vector.load %arg2[%c0_6, %c0_7, %c0_8] : memref<1x1x8xf32, #tpu.memory_space<vmem>>, vector<1x1x8xf32>
    tpu.vector_store %arg2[%c0_6, %c0_7, %c0_8], %10 {strides = array<i32>} : memref<1x1x8xf32, #tpu.memory_space<vmem>>, vector<1x1x8xf32>,
    return
  }
  func.func @transform_0(%arg0: i32) -> (i32, i32, i32) {
    %c0_i32 = arith.constant 0 : i32
    %c0_i32_0 = arith.constant 0 : i32
    %c0_i32_1 = arith.constant 0 : i32
    return %arg0, %c0_i32, %c0_i32_0 : i32, i32, i32
  }
  func.func @transform_1(%arg0: i32) -> (i32, i32, i32) {
    %c0_i32 = arith.constant 0 : i32
    %c0_i32_0 = arith.constant 0 : i32
    %c0_i32_1 = arith.constant 0 : i32
    return %arg0, %c0_i32, %c0_i32_0 : i32, i32, i32
  }
}

</mosaic_0001>

<bundles_post_ra>
// kernel: _frat_forward.1
= control target key start
LH: loop header
LB: loop body
LE: loop exit
PB: predicated region body
PF: predicated region fallthrough
CT: control target
= control target key end

     0   :  { %vm47_vm0 = vcmask 334848   ;;  %vm361_vm1 = vcmask 1041409   ;;  %vm363_vm2 = vcmask 1042434   ;;  %vm365_vm3 = vcmask 1043459   ;;  %s772_s0 = inlined_call_operand.vmem [shape: f32[8,16,169], index: 0, kind: input, shape index: {}]   ;;  %s773_s1 = inlined_call_operand.vmem [shape: f32[1,1,8], index: 1, kind: output, shape index: {}]  }
   0x1   :  { %v419_v0 = vld [vmem:[%s772_s0] sm:$0xff]  ;;  %v424_v1 = vld [vmem:[%s772_s0 + $0x8] sm:$0xff]  ;;  %v429_v2 = vld [vmem:[%s772_s0 + $0x10] sm:$0xff]  ;;  %vm367_vm4 = vcmask 1044484   ;;  %vm369_vm5 = vcmask 1045509   ;;  %vm371_vm6 = vcmask 1046534  }
   0x2   :  { %v434_v3 = vld [vmem:[%s772_s0 + $0x18] sm:$0xff]  ;;  %v439_v4 = vld [vmem:[%s772_s0 + $0x20] sm:$0xff]  ;;  %v444_v5 = vld [vmem:[%s772_s0 + $0x28] sm:$0xff]  ;;  %v40_v6 = vmax.f32 %v419_v0, %v429_v2  ;;  %v48_v7 = vsel %vm47_vm0, %v424_v1, -inf  ;;  %vm373_vm7 = vcmask 1047559   ;;  %vm398_vm8 = vcmask 57344  }
   0x3   :  { %v453_v8 = vld [vmem:[%s772_s0 + $0x30] sm:$0xff]  ;;  %v458_v9 = vld [vmem:[%s772_s0 + $0x38] sm:$0xff]  ;;  %v463_v10 = vld [vmem:[%s772_s0 + $0x40] sm:$0xff]  ;;  %v49_v11 = vsel %vm47_vm0, %v434_v3, -inf  ;;  %v64_v12 = vsel %vm47_vm0, %v444_v5, -inf }
   0x4   :  { %v472_v13 = vld [vmem:[%s772_s0 + $0x48] sm:$0xff]  ;;  %v477_v14 = vld [vmem:[%s772_s0 + $0x50] sm:$0xff]  ;;  %v482_v15 = vld [vmem:[%s772_s0 + $0x58] sm:$0xff]  ;;  %v41_v16 = vrot.slane %v40_v6, 4  ;;  %v50_v17 = vmax.f32 %v48_v7, %v49_v11  ;;  %v57_v18 = vmax.f32 %v439_v4, %v453_v8  ;;  %v65_v19 = vsel %vm47_vm0, %v458_v9, -inf }
   0x5   :  { %v491_v20 = vld [vmem:[%s772_s0 + $0x60] sm:$0xff]  ;;  %v496_v21 = vld [vmem:[%s772_s0 + $0x68] sm:$0xff]  ;;  %v501_v22 = vld [vmem:[%s772_s0 + $0x70] sm:$0xff]  ;;  %v66_v23 = vmax.f32 %v64_v12, %v65_v19  ;;  %v73_v24 = vmax.f32 %v463_v10, %v477_v14  ;;  %v80_v25 = vsel %vm47_vm0, %v472_v13, -inf  ;;  %v81_v26 = vsel %vm47_vm0, %v482_v15, -inf }
   0x6   :  { %v512_v27 = vld [vmem:[%s772_s0 + $0x78] sm:$0xff]  ;;  %v42_v28 = vmax.f32 %v40_v6, %v41_v16  ;;  %v51_v29 = vrot.slane %v50_v17, 4  ;;  %v58_v30 = vrot.slane %v57_v18, 4  ;;  %v82_v31 = vmax.f32 %v80_v25, %v81_v26  ;;  %v523_v56 = vld [vmem:[%s772_s0 + $0x80] sm:$0xff]  ;;  %v528_v57 = vld [vmem:[%s772_s0 + $0x90] sm:$0xff] }
   0x7   :  { %v67_v32 = vrot.slane %v66_v23, 4  ;;  %v74_v33 = vrot.slane %v73_v24, 4  ;;  %v89_v34 = vmax.f32 %v491_v20, %v501_v22  ;;  %v96_v35 = vsel %vm47_vm0, %v496_v21, -inf  ;;  %v539_v11 = vld [vmem:[%s772_s0 + $0x88] sm:$0xff]  ;;  %v544_v12 = vld [vmem:[%s772_s0 + $0x98] sm:$0xff] }
   0x8   :  { %v43_v36 = vrot.slane %v42_v28, 2  ;;  %v52_v37 = vmax.f32 %v50_v17, %v51_v29  ;;  %v59_v38 = vmax.f32 %v57_v18, %v58_v30  ;;  %v83_v39 = vrot.slane %v82_v31, 4  ;;  %v583_v29 = vld [vmem:[%s772_s0 + $0xc0] sm:$0xff]  ;;  %v588_v30 = vld [vmem:[%s772_s0 + $0xd0] sm:$0xff] }
   0x9   :  { %v68_v40 = vmax.f32 %v66_v23, %v67_v32  ;;  %v75_v41 = vmax.f32 %v73_v24, %v74_v33  ;;  %v90_v42 = vrot.slane %v89_v34, 4  ;;  %v97_v43 = vsel %vm47_vm0, %v512_v27, -inf  ;;  %v563_v23 = vld [vmem:[%s772_s0 + $0xb0] sm:$0xff] }
   0xa   :  { %v44_v44 = vmax.f32 %v42_v28, %v43_v36  ;;  %v53_v45 = vrot.slane %v52_v37, 2  ;;  %v60_v46 = vrot.slane %v59_v38, 2  ;;  %v84_v47 = vmax.f32 %v82_v31, %v83_v39  ;;  %v578_v28 = vld [vmem:[%s772_s0 + $0xb8] sm:$0xff] }
   0xb   :  { %v69_v48 = vrot.slane %v68_v40, 2  ;;  %v76_v49 = vrot.slane %v75_v41, 2  ;;  %v91_v50 = vmax.f32 %v89_v34, %v90_v42  ;;  %v98_v51 = vmax.f32 %v96_v35, %v97_v43  ;;  %v609_v39 = vld [vmem:[%s772_s0 + $0xd8] sm:$0xff] }
   0xc   :  { %v45_v52 = vrot.slane %v44_v44, 1  ;;  %v54_v53 = vmax.f32 %v52_v37, %v53_v45  ;;  %v61_v54 = vmax.f32 %v59_v38, %v60_v46  ;;  %v85_v55 = vrot.slane %v84_v47, 2  ;;  %v604_v38 = vld [vmem:[%s772_s0 + $0xc8] sm:$0xff] }
   0xd   :  { %v70_v58 = vmax.f32 %v68_v40, %v69_v48  ;;  %v77_v59 = vmax.f32 %v75_v41, %v76_v49  ;;  %v92_v60 = vrot.slane %v91_v50, 2  ;;  %v99_v61 = vrot.slane %v98_v51, 4  ;;  %v624_v48 = vld [vmem:[%s772_s0 + $0xe0] sm:$0xff]  ;;  %v629_v49 = vld [vmem:[%s772_s0 + $0xf0] sm:$0xff] }
   0xe   :  { %v55_v62 = vrot.slane %v54_v53, 1  ;;  %v62_v63 = vrot.slane %v61_v54, 1  ;;  %v530_v6 = vmax.f32 %v84_v47, %v85_v55  ;;  %v534_v7 = vmin.f32 %v419_v0, %v429_v2  ;;  %v553_v0 = vld [vmem:[%s772_s0 + $0xa0] sm:$0xff]  ;;  %v558_v2 = vld [vmem:[%s772_s0 + $0xa8] sm:$0xff] }
   0xf   :  { %v71_v16 = vrot.slane %v70_v58, 1  ;;  %v78_v17 = vrot.slane %v77_v59, 1  ;;  %v100_v18 = vmax.f32 %v98_v51, %v99_v61  ;;  %v548_v19 = vsel %vm47_vm0, %v424_v1, inf }
  0x10   :  { %v565_v24 = vmax.f32 %v44_v44, %v45_v52  ;;  %v567_v25 = vmax.f32 %v91_v50, %v92_v60  ;;  %v105_v1 = vmax.f32 %v523_v56, %v528_v57  ;;  %v573_v26 = vsel %vm47_vm0, %v434_v3, inf }
  0x11   :  { %v590_v31 = vmax.f32 %v54_v53, %v55_v62  ;;  %v592_v32 = vmax.f32 %v61_v54, %v62_v63  ;;  %v87_v3 = vrot.slane %v530_v6, 1  ;;  %v101_v33 = vrot.slane %v100_v18, 2  ;;  %v635_v54 = vld [vmem:[%s772_s0 + $0xe8] sm:$0xff] }
  0x12   :  { %775 = vst [vmem:[#allocation2_spill] sm:$0xff] %v565_v24  ;;  %v595_v34 = vmax.f32 %v70_v58, %v71_v16  ;;  %v106_v35 = vrot.slane %v105_v1, 4  ;;  %v112_v36 = vsel %vm47_vm0, %v539_v11, -inf  ;;  %v113_v37 = vsel %vm47_vm0, %v544_v12, -inf  ;;  %780 = vst [vmem:[#allocation7_spill] sm:$0xff] %v635_v54 }
  0x13   :  { %776 = vst [vmem:[#allocation3_spill] sm:$0xff] %v590_v31  ;;  %777 = vst [vmem:[#allocation4_spill] sm:$0xff] %v592_v32  ;;  %v611_v40 = vmax.f32 %v77_v59, %v78_v17  ;;  %v102_v41 = vmax.f32 %v100_v18, %v101_v33  ;;  %v114_v42 = vmax.f32 %v112_v36, %v113_v37  ;;  %v128_v45 = vsel %vm47_vm0, %v558_v2, -inf  ;;  %v644_v17 = vld [vmem:[%s772_s0 + $0xf8] sm:$0xff] }
  0x14   :  { %778 = vst [vmem:[#allocation5_spill] sm:$0xff] %v595_v34  ;;  %v121_v43 = vmax.f32 %v553_v0, %v563_v23  ;;  %v107_v44 = vmax.f32 %v105_v1, %v106_v35  ;;  %v129_v46 = vsel %vm47_vm0, %v578_v28, -inf  ;;  %v137_v47 = vmax.f32 %v583_v29, %v588_v30 }
  0x15   :  { %779 = vst [vmem:[#allocation6_spill] sm:$0xff] %v611_v40  ;;  %v94_v50 = vrot.slane %v567_v25, 1  ;;  %v115_v51 = vrot.slane %v114_v42, 4  ;;  %v130_v53 = vmax.f32 %v128_v45, %v129_v46  ;;  %v144_v59 = vsel %vm47_vm0, %v604_v38, -inf }
  0x16   :  { %v122_v52 = vrot.slane %v121_v43, 4  ;;  %v108_v55 = vrot.slane %v107_v44, 2  ;;  %v138_v58 = vrot.slane %v137_v47, 4  ;;  %v145_v60 = vsel %vm47_vm0, %v609_v39, -inf }
  0x17   :  { %v103_v61 = vrot.slane %v102_v41, 1  ;;  %v116_v62 = vmax.f32 %v114_v42, %v115_v51  ;;  %v131_v16 = vrot.slane %v130_v53, 4  ;;  %v146_v33 = vmax.f32 %v144_v59, %v145_v60 }
  0x18   :  { %v123_v63 = vmax.f32 %v121_v43, %v122_v52  ;;  %v109_v18 = vmax.f32 %v107_v44, %v108_v55  ;;  %v139_v1 = vmax.f32 %v137_v47, %v138_v58  ;;  %v153_v35 = vmax.f32 %v624_v48, %v629_v49 }
  0x19   :  { %v117_v36 = vrot.slane %v116_v62, 2  ;;  %v132_v45 = vmax.f32 %v130_v53, %v131_v16  ;;  %v160_v46 = vsel %vm47_vm0, %v635_v54, -inf  ;;  %v147_v51 = vrot.slane %v146_v33, 4 }
  0x1a   :  { %v124_v37 = vrot.slane %v123_v63, 2  ;;  %v110_v42 = vrot.slane %v109_v18, 1  ;;  %v140_v43 = vrot.slane %v139_v1, 2  ;;  %v154_v52 = vrot.slane %v153_v35, 4 }
  0x1b   :  { %v118_v40 = vmax.f32 %v116_v62, %v117_v36  ;;  %v133_v32 = vrot.slane %v132_v45, 2  ;;  %v161_v44 = vsel %vm47_vm0, %v644_v17, -inf  ;;  %v653_v47 = vmax.f32 %v530_v6, %v87_v3 }
  0x1c   :  { %v125_v34 = vmax.f32 %v123_v63, %v124_v37  ;;  %v141_v55 = vmax.f32 %v139_v1, %v140_v43  ;;  %v148_v58 = vmax.f32 %v146_v33, %v147_v51  ;;  %v155_v59 = vmax.f32 %v153_v35, %v154_v52 }
  0x1d   :  { %v119_v53 = vrot.slane %v118_v40, 1  ;;  %v134_v16 = vmax.f32 %v132_v45, %v133_v32  ;;  %v162_v31 = vmax.f32 %v160_v46, %v161_v44  ;;  %v656_v24 = vmax.f32 %v567_v25, %v94_v50 }
  0x1e   :  { %v126_v60 = vrot.slane %v125_v34, 1  ;;  %v149_v54 = vrot.slane %v148_v58, 2  ;;  %v156_v62 = vrot.slane %v155_v59, 2  ;;  %v170_v63 = vrot.slane %v534_v7, 4 }
  0x1f   :  { %v659_v36 = vmax.f32 %v102_v41, %v103_v61  ;;  %v661_v37 = vmax.f32 %v109_v18, %v110_v42  ;;  %v142_v6 = vrot.slane %v141_v55, 1  ;;  %v163_v3 = vrot.slane %v162_v31, 4 }
  0x20   :  { %v663_v1 = vmax.f32 %v118_v40, %v119_v53  ;;  %v135_v33 = vrot.slane %v134_v16, 1  ;;  %v150_v35 = vmax.f32 %v148_v58, %v149_v54  ;;  %v171_v32 = vmin.f32 %v534_v7, %v170_v63 }
  0x21   :  { %v666_v45 = vmax.f32 %v125_v34, %v126_v60  ;;  %v164_v25 = vmax.f32 %v162_v31, %v163_v3  ;;  %v178_v50 = vmin.f32 %v548_v19, %v573_v26  ;;  %v185_v41 = vmin.f32 %v439_v4, %v453_v8 }
  0x22   :  { %v151_v61 = vrot.slane %v150_v35, 1  ;;  %v157_v18 = vmax.f32 %v155_v59, %v156_v62  ;;  %v172_v46 = vrot.slane %v171_v32, 2  ;;  %v192_v40 = vsel %vm47_vm0, %v444_v5, inf }
  0x23   :  { %v165_v42 = vrot.slane %v164_v25, 2  ;;  %v179_v43 = vrot.slane %v178_v50, 4  ;;  %v186_v54 = vrot.slane %v185_v41, 4  ;;  %v193_v7 = vsel %vm47_vm0, %v458_v9, inf }
  0x24   :  { %v676_v34 = vmax.f32 %v134_v16, %v135_v33  ;;  %v678_v31 = vmax.f32 %v141_v55, %v142_v6  ;;  %v173_v19 = vmin.f32 %v171_v32, %v172_v46  ;;  %v194_v26 = vmin.f32 %v192_v40, %v193_v7 }
  0x25   :  { %v166_v51 = vmax.f32 %v164_v25, %v165_v42  ;;  %v180_v4 = vmin.f32 %v178_v50, %v179_v43  ;;  %v187_v8 = vmin.f32 %v185_v41, %v186_v54  ;;  %v201_v52 = vmin.f32 %v463_v10, %v477_v14 }
  0x26   :  { %v158_v44 = vrot.slane %v157_v18, 1  ;;  %v195_v5 = vrot.slane %v194_v26, 4  ;;  %v208_v58 = vsel %vm47_vm0, %v472_v13, inf  ;;  %v209_v9 = vsel %vm47_vm0, %v482_v15, inf }
  0x27   :  { %v686_v59 = vmax.f32 %v150_v35, %v151_v61  ;;  %v181_v55 = vrot.slane %v180_v4, 2  ;;  %v188_v53 = vrot.slane %v187_v8, 2  ;;  %v202_v60 = vrot.slane %v201_v52, 4 }
  0x28   :  { %v174_v16 = vrot.slane %v173_v19, 1  ;;  %v196_v62 = vmin.f32 %v194_v26, %v195_v5  ;;  %v210_v63 = vmin.f32 %v208_v58, %v209_v9  ;;  %v217_v6 = vmin.f32 %v491_v20, %v501_v22 }
  0x29   :  { %v167_v10 = vrot.slane %v166_v51, 1  ;;  %v182_v14 = vmin.f32 %v180_v4, %v181_v55  ;;  %v189_v3 = vmin.f32 %v187_v8, %v188_v53  ;;  %v203_v33 = vmin.f32 %v201_v52, %v202_v60 }
  0x2a   :  { %v197_v32 = vrot.slane %v196_v62, 2  ;;  %v211_v13 = vrot.slane %v210_v63, 4  ;;  %v218_v25 = vrot.slane %v217_v6, 4  ;;  %v224_v15 = vsel %vm47_vm0, %v496_v21, inf }
  0x2b   :  { %v692_v35 = vmax.f32 %v157_v18, %v158_v44  ;;  %v183_v50 = vrot.slane %v182_v14, 1  ;;  %v204_v41 = vrot.slane %v203_v33, 2  ;;  %v225_v61 = vsel %vm47_vm0, %v512_v27, inf }
  0x2c   :  { %v198_v46 = vmin.f32 %v196_v62, %v197_v32  ;;  %v212_v40 = vmin.f32 %v210_v63, %v211_v13  ;;  %v219_v20 = vmin.f32 %v217_v6, %v218_v25  ;;  %v226_v22 = vmin.f32 %v224_v15, %v225_v61 }
  0x2d   :  { %v696_v42 = vmin.f32 %v173_v19, %v174_v16  ;;  %v190_v43 = vrot.slane %v189_v3, 1  ;;  %v205_v54 = vmin.f32 %v203_v33, %v204_v41  ;;  %v233_v7 = vmin.f32 %v523_v56, %v528_v57 }
  0x2e   :  { %v700_v26 = vmax.f32 %v166_v51, %v167_v10  ;;  %v213_v21 = vrot.slane %v212_v40, 2  ;;  %v220_v18 = vrot.slane %v219_v20, 2  ;;  %v227_v4 = vrot.slane %v226_v22, 4 }
  0x2f   :  { %v702_v8 = vmin.f32 %v182_v14, %v183_v50  ;;  %v234_v52 = vrot.slane %v233_v7, 4  ;;  %v240_v27 = vsel %vm47_vm0, %v539_v11, inf  ;;  %v241_v19 = vsel %vm47_vm0, %v544_v12, inf }
  0x30   :  { %v199_v44 = vrot.slane %v198_v46, 1  ;;  %v206_v5 = vrot.slane %v205_v54, 1  ;;  %v214_v58 = vmin.f32 %v212_v40, %v213_v21  ;;  %v228_v9 = vmin.f32 %v226_v22, %v227_v4  ;;  %v781_v4 = vld [vmem:[#allocation7_spill] sm:$0xff] }
  0x31   :  { %v708_v55 = vmin.f32 %v189_v3, %v190_v43  ;;  %v235_v56 = vmin.f32 %v233_v7, %v234_v52  ;;  %v242_v57 = vmin.f32 %v240_v27, %v241_v19  ;;  %v249_v51 = vmin.f32 %v553_v0, %v563_v23 }
  0x32   :  { %v215_v53 = vrot.slane %v214_v58, 1  ;;  %v221_v60 = vmin.f32 %v219_v20, %v220_v18  ;;  %v229_v16 = vrot.slane %v228_v9, 2  ;;  %v256_v11 = vsel %vm47_vm0, %v558_v2, inf }
  0x33   :  { %v236_v62 = vrot.slane %v235_v56, 2  ;;  %v243_v63 = vrot.slane %v242_v57, 4  ;;  %v250_v12 = vrot.slane %v249_v51, 4  ;;  %v257_v6 = vsel %vm47_vm0, %v578_v28, inf }
  0x34   :  { %v716_v10 = vmin.f32 %v198_v46, %v199_v44  ;;  %v718_v14 = vmin.f32 %v205_v54, %v206_v5  ;;  %v230_v3 = vmin.f32 %v228_v9, %v229_v16  ;;  %v258_v33 = vmin.f32 %v256_v11, %v257_v6 }
  0x35   :  { %v237_v32 = vmin.f32 %v235_v56, %v236_v62  ;;  %v244_v0 = vmin.f32 %v242_v57, %v243_v63  ;;  %v251_v23 = vmin.f32 %v249_v51, %v250_v12  ;;  %v265_v13 = vmin.f32 %v583_v29, %v588_v30 }
  0x36   :  { %v222_v25 = vrot.slane %v221_v60, 1  ;;  %v259_v2 = vrot.slane %v258_v33, 4  ;;  %v272_v15 = vsel %vm47_vm0, %v604_v38, inf  ;;  %v273_v28 = vsel %vm47_vm0, %v609_v39, inf }
  0x37   :  { %v726_v50 = vmin.f32 %v214_v58, %v215_v53  ;;  %v245_v41 = vrot.slane %v244_v0, 2  ;;  %v252_v61 = vrot.slane %v251_v23, 2  ;;  %v266_v46 = vrot.slane %v265_v13, 4 }
  0x38   :  { %v231_v40 = vrot.slane %v230_v3, 1  ;;  %v260_v20 = vmin.f32 %v258_v33, %v259_v2  ;;  %v274_v22 = vmin.f32 %v272_v15, %v273_v28  ;;  %v281_v43 = vmin.f32 %v624_v48, %v629_v49  ;;  %v782_v33 = vld [vmem:[#allocation2_spill] sm:$0xff]  ;;  %v783_v2 = vld [vmem:[#allocation3_spill] sm:$0xff]  ;;  %v785_v28 = vld [vmem:[#allocation5_spill] sm:$0xff] }
  0x39   :  { %v238_v29 = vrot.slane %v237_v32, 1  ;;  %v246_v30 = vmin.f32 %v244_v0, %v245_v41  ;;  %v253_v54 = vmin.f32 %v251_v23, %v252_v61  ;;  %v267_v7 = vmin.f32 %v265_v13, %v266_v46 }
  0x3a   :  { %v261_v21 = vrot.slane %v260_v20, 2  ;;  %v275_v38 = vrot.slane %v274_v22, 4  ;;  %v282_v18 = vrot.slane %v281_v43, 4  ;;  %v288_v39 = vsel %vm47_vm0, %v781_v4, inf }
  0x3b   :  { %v247_v52 = vrot.slane %v246_v30, 1  ;;  %v254_v27 = vrot.slane %v253_v54, 1  ;;  %v268_v19 = vrot.slane %v267_v7, 2  ;;  %v289_v44 = vsel %vm47_vm0, %v644_v17, inf }
  0x3c   :  { %v262_v5 = vmin.f32 %v260_v20, %v261_v21  ;;  %v276_v58 = vmin.f32 %v274_v22, %v275_v38  ;;  %v283_v9 = vmin.f32 %v281_v43, %v282_v18  ;;  %v290_v48 = vmin.f32 %v288_v39, %v289_v44  ;;  %v786_v20 = vld [vmem:[#allocation6_spill] sm:$0xff] }
  0x3d   :  { %v223_v49 = vmin.f32 %v221_v60, %v222_v25  ;;  %v232_v56 = vmin.f32 %v230_v3, %v231_v40  ;;  %v239_v57 = vmin.f32 %v237_v32, %v238_v29  ;;  %v269_v51 = vmin.f32 %v267_v7, %v268_v19  ;;  %v784_v32 = vld [vmem:[#allocation4_spill] sm:$0xff] }
  0x3e   :  { %v263_v53 = vrot.slane %v262_v5, 1  ;;  %v277_v16 = vrot.slane %v276_v58, 2  ;;  %v284_v11 = vrot.slane %v283_v9, 2  ;;  %v291_v62 = vrot.slane %v290_v48, 4 }
  0x3f   :  { %v248_v63 = vmin.f32 %v246_v30, %v247_v52  ;;  %v255_v12 = vmin.f32 %v253_v54, %v254_v27  ;;  %v270_v6 = vrot.slane %v269_v51, 1  ;;  %v297_v0 = vsub.f32 %v782_v33, %v696_v42 }
  0x40   :  { %v278_v23 = vmin.f32 %v276_v58, %v277_v16  ;;  %v285_v17 = vmin.f32 %v283_v9, %v284_v11  ;;  %v292_v13 = vmin.f32 %v290_v48, %v291_v62  ;;  %v298_v15 = vsub.f32 %v783_v2, %v702_v8 }
  0x41   :  { %v264_v60 = vmin.f32 %v262_v5, %v263_v53  ;;  %v271_v3 = vmin.f32 %v269_v51, %v270_v6  ;;  %v299_v25 = vsub.f32 %v784_v32, %v708_v55  ;;  %v300_v41 = vsub.f32 %v785_v28, %v716_v10 }
  0x42   :  { %v279_v61 = vrot.slane %v278_v23, 1  ;;  %v286_v46 = vrot.slane %v285_v17, 1  ;;  %v293_v40 = vrot.slane %v292_v13, 2  ;;  %v301_v42 = vsub.f32 %v786_v20, %v718_v14 }
  0x43   :  { %v302_v22 = vsub.f32 %v653_v47, %v726_v50  ;;  %v303_v43 = vsub.f32 %v656_v24, %v223_v49  ;;  %v304_v8 = vsub.f32 %v659_v36, %v232_v56  ;;  %v305_v29 = vsub.f32 %v661_v37, %v239_v57 }
  0x44   :  { %v280_v55 = vmin.f32 %v278_v23, %v279_v61  ;;  %v287_v30 = vmin.f32 %v285_v17, %v286_v46  ;;  %v294_v54 = vmin.f32 %v292_v13, %v293_v40  ;;  %v306_v10 = vsub.f32 %v663_v1, %v248_v63 }
  0x45   :  { %v307_v7 = vsub.f32 %v666_v45, %v255_v12  ;;  %v308_v14 = vsub.f32 %v676_v34, %v264_v60  ;;  %v309_v21 = vsub.f32 %v678_v31, %v271_v3  ;;  %v313_v47 = vmul.f32 4.0, %v297_v0 }
  0x46   :  { %v295_v24 = vrot.slane %v294_v54, 1  ;;  %v314_v50 = vmul.f32 4.0, %v298_v15  ;;  %v315_v36 = vmul.f32 4.0, %v299_v25  ;;  %v316_v38 = vmul.f32 4.0, %v300_v41 }
  0x47   :  { %v310_v37 = vsub.f32 %v686_v59, %v280_v55  ;;  %v311_v18 = vsub.f32 %v692_v35, %v287_v30  ;;  %v317_v4 = vmul.f32 4.0, %v301_v42  ;;  %v318_v1 = vmul.f32 4.0, %v302_v22 }
  0x48   :  { %v296_v39 = vmin.f32 %v294_v54, %v295_v24  ;;  %v319_v52 = vmul.f32 4.0, %v303_v43  ;;  %v320_v45 = vmul.f32 4.0, %v304_v8  ;;  %v321_v27 = vmul.f32 4.0, %v305_v29 }
  0x49   :  { %v322_v34 = vmul.f32 4.0, %v306_v10  ;;  %v323_v19 = vmul.f32 4.0, %v307_v7  ;;  %v324_v31 = vmul.f32 4.0, %v308_v14  ;;  %v329_v44 = vadd.f32 1.0, %v313_v47 }
  0x4a   :  { %v312_v5 = vsub.f32 %v700_v26, %v296_v39  ;;  %v330_v58 = vadd.f32 1.0, %v314_v50  ;;  %v331_v9 = vadd.f32 1.0, %v315_v36  ;;  %v332_v48 = vadd.f32 1.0, %v316_v38 }
  0x4b   :  { %v325_v49 = vmul.f32 4.0, %v309_v21  ;;  %v326_v56 = vmul.f32 4.0, %v310_v37  ;;  %v333_v59 = vadd.f32 1.0, %v317_v4  ;;  %v334_v57 = vadd.f32 1.0, %v318_v1 }
  0x4c   :  { %v327_v35 = vmul.f32 4.0, %v311_v18  ;;  %v328_v51 = vmul.f32 4.0, %v312_v5  ;;  %v335_v53 = vadd.f32 1.0, %v319_v52  ;;  %v336_v16 = vadd.f32 1.0, %v320_v45 }
  0x4d   :  { %v337_v11 = vadd.f32 1.0, %v321_v27  ;;  %v338_v62 = vadd.f32 1.0, %v322_v34  ;;  %v339_v63 = vadd.f32 1.0, %v323_v19  ;;  %v340_v12 = vadd.f32 1.0, %v324_v31 }
  0x4e   :  { %v362_v6 = vsel %vm361_vm1, %v331_v9, %v329_v44  ;;  %v375_v26 = vsel %vm361_vm1, %v332_v48, %v330_v58  ;;  %v341_v33 = vadd.f32 1.0, %v325_v49  ;;  %v342_v0 = vadd.f32 1.0, %v326_v56 }
  0x4f   :  { %v364_v23 = vsel %vm363_vm2, %v333_v59, %v362_v6  ;;  %v376_v17 = vsel %vm363_vm2, %v334_v57, %v375_v26  ;;  %v343_v13 = vadd.f32 1.0, %v327_v35  ;;  %v344_v2 = vadd.f32 1.0, %v328_v51 }
  0x50   :  { %v366_v15 = vsel %vm365_vm3, %v335_v53, %v364_v23  ;;  %v377_v60 = vsel %vm365_vm3, %v336_v16, %v376_v17  ;;  %v391_v43 = vlaneseq }
  0x51   :  { %v368_v3 = vsel %vm367_vm4, %v337_v11, %v366_v15  ;;  %v378_v32 = vsel %vm367_vm4, %v338_v62, %v377_v60 }
  0x52   :  { %v370_v25 = vsel %vm369_vm5, %v339_v63, %v368_v3  ;;  %v379_v28 = vsel %vm369_vm5, %v340_v12, %v378_v32  ;;  %v392_v8 = vand.u32 127, %v391_v43  ;;  %v394_v29 = vshrl.u32 %v391_v43, 7 }
  0x53   :  { %v372_v41 = vsel %vm371_vm6, %v341_v33, %v370_v25  ;;  %v380_v61 = vsel %vm371_vm6, %v342_v0, %v379_v28 }
  0x54   :  { %v374_v46 = vsel %vm373_vm7, %v343_v13, %v372_v41  ;;  %v381_v40 = vsel %vm373_vm7, %v344_v2, %v380_v61  ;;  %v395_v55 = vsub.s32 %v392_v8, %v394_v29 }
  0x55   :  { %v384_v20 = vsel %vm47_vm0, %v381_v40, 0.0 }
  0x56   :  { %v385_v42 = vadd.f32 %v384_v20, %v374_v46 }
  0x58   :  { %386 = vadd.xlane.f32.xlu0 %v385_v42 }
  0xe5   :  { %v387_v22 = vpop.xlane.xlu0 %386 }
  0xe6   :  { %404 = vlog2.f32 %v387_v22 }
  0xf0   :  { %v405_v30 = vpop.eup %404 }
  0xf1   :  { %v389_v54 = vmul.f32 0.6931472, %v405_v30 }
  0xf3   :  { %v396_v10 = vrot.slane %v389_v54, %v395_v55 }
  0xf5   :  { %399 = vst.msk [vmem:[%s773_s1] sm:$0x1] %vm398_vm8, %v396_v10 }

</bundles_post_ra>
